<compile_context>
chip_gen: v7x
topology: tpu7x:2x2x1
jax: 0.10.0
libtpu: 0.0.40
codegen_flags: <defaults>
</compile_context>

<pallas_src>
import jax
import jax.numpy as jnp
from jax.experimental import pallas as pl
from jax.experimental.pallas import tpu as pltpu


def _round_up(x, m):
    return (x + m - 1) // m * m


def orthogonal_input(x):
    # x: [..., 2, C] -> [..., 2, C] with rows (-x[...,1,:], x[...,0,:])
    return jnp.concatenate((-x[..., 1:2, :], x[..., 0:1, :]), axis=-2)


# -----------------------------------------------------------------------------
# JAX-side layout glue: transposed im2col with replicate padding folded into a
# clamped gather (no extra HBM pad pass, no strided in-kernel loads).
# -----------------------------------------------------------------------------
def _im2col_T(x, k, stride, padding, n_out):
    """x: [B, N, W, C] -> [K*C, B*W*N_out] with
       out[kk*C + c, (b*W + w)*N_out + t] = x[b, clip(t*stride + kk - padding, 0, N-1), w, c]
    """
    b, n, wdim, c = x.shape
    xp = jnp.transpose(x, (3, 0, 2, 1))                                   # [C, B, W, N]
    t_idx = jnp.arange(n_out) * stride - padding
    gather = jnp.clip(t_idx[:, None] + jnp.arange(k)[None, :], 0, n - 1)  # [N_out, K]
    xg = jnp.take(xp, gather.reshape(-1), axis=-1)                        # [C, B, W, N_out*K]
    xg = xg.reshape(c, b, wdim, n_out, k)
    xg = jnp.transpose(xg, (4, 0, 1, 2, 3))                               # [K, C, B, W, N_out]
    return xg.reshape(k * c, b * wdim * n_out)


def _pad_cols(a, total):
    pad = total - a.shape[1]
    return jnp.pad(a, ((0, 0), (0, pad))) if pad > 0 else a


# -----------------------------------------------------------------------------
# Fused Pallas kernel: vector + scalar branch, one lane-dense matmul each.
# -----------------------------------------------------------------------------
def _fused_conv_kernel(wv_ref, xv_ref, ws_ref, xs_ref, ov_ref, os_ref):
    # wv: (Cov, KCv)  xv: (KCv, 2*T)   -> ov: (Cov, 2*T)   (lane-dense store)
    # ws: (Cos, KCs)  xs: (KCs, T)     -> os: (Cos, T)
    ov_ref[...] = jnp.dot(wv_ref[...], xv_ref[...],
                          preferred_element_type=jnp.float32).astype(ov_ref.dtype)
    os_ref[...] = jnp.dot(ws_ref[...], xs_ref[...],
                          preferred_element_type=jnp.float32).astype(os_ref.dtype)


def fused_conv_pallas(wv_t, xv_t, ws_t, xs_t, *, lane_tile=512,
                      out_dtype=jnp.float32):
    """wv_t: [Cov, KCv], xv_t: [KCv, Rv], ws_t: [Cos, KCs], xs_t: [KCs, Rs].
       Requires Rv == 2 * Rs (vector branch has 2 W-positions per batch row)."""
    cov, kcv = wv_t.shape
    cos, kcs = ws_t.shape
    rv, rs = xv_t.shape[1], xs_t.shape[1]
    assert rv == 2 * rs

    ts = min(lane_tile, _round_up(max(rs, 1), 128))   # scalar-branch lane tile
    n_tiles = pl.cdiv(rs, ts)
    rs_pad = n_tiles * ts
    tv = 2 * ts                                       # vector-branch lane tile
    rv_pad = n_tiles * tv

    xv_t = _pad_cols(xv_t, rv_pad)
    xs_t = _pad_cols(xs_t, rs_pad)

    ov_t, os_t = pl.pallas_call(
        _fused_conv_kernel,
        out_shape=(jax.ShapeDtypeStruct((cov, rv_pad), out_dtype),
                   jax.ShapeDtypeStruct((cos, rs_pad), out_dtype)),
        grid=(n_tiles,),
        in_specs=[
            pl.BlockSpec((cov, kcv), lambda i: (0, 0)),   # resident weights
            pl.BlockSpec((kcv, tv), lambda i: (0, i)),
            pl.BlockSpec((cos, kcs), lambda i: (0, 0)),
            pl.BlockSpec((kcs, ts), lambda i: (0, i)),
        ],
        out_specs=(pl.BlockSpec((cov, tv), lambda i: (0, i)),
                   pl.BlockSpec((cos, ts), lambda i: (0, i))),
        compiler_params=pltpu.CompilerParams(dimension_semantics=("parallel",)),
    )(wv_t, xv_t, ws_t, xs_t)

    return ov_t[:, :rv], os_t[:, :rs]


# -----------------------------------------------------------------------------
# Module equivalent
# -----------------------------------------------------------------------------
class ConvolutionalPallas:
    """Pallas port of EqNIO Convolutional (bias=False)."""

    def __init__(self, dim_in, dim_out, scalar_dim_out, scalar_dim_in,
                 stride=1, padding=0, kernel=(16, 1), key=None,
                 compute_dtype=jnp.float32):
        assert kernel[1] == 1
        self.dim_in = dim_in
        self.stride = stride
        self.padding = padding
        self.k = kernel[0]
        self.compute_dtype = compute_dtype
        key = jax.random.PRNGKey(0) if key is None else key
        k1, k2 = jax.random.split(key)
        # PyTorch Conv2d weights: [C_out, C_in, kH, kW=1]
        w_vec = jax.random.normal(k1, (dim_out, dim_in, self.k, 1), jnp.float32) * 0.05
        w_sca = jax.random.normal(k2, (scalar_dim_out, scalar_dim_in, self.k, 1),
                                  jnp.float32) * 0.05
        self.w_vec_torch = w_vec
        self.w_sca_torch = w_sca
        # W_flat^T : [C_out, K*C_in], column index = kk*C_in + c
        self.w_vec_t = jnp.transpose(w_vec[..., 0], (0, 2, 1)).reshape(
            dim_out, self.k * dim_in)
        self.w_sca_t = jnp.transpose(w_sca[..., 0], (0, 2, 1)).reshape(
            scalar_dim_out, self.k * scalar_dim_in)

    def __call__(self, vector, scalar):
        # vector: [B, N, 2, c]  (c = dim_in // 2),  scalar: [B, N, scalar_dim_in]
        b, n, two, c = vector.shape
        assert two == 2 and 2 * c == self.dim_in
        n_out = (n + 2 * self.padding - self.k) // self.stride + 1

        # channel concat (vector, orthogonal) -> [B, N, 2, 2c]
        v_cat = jnp.concatenate((vector, orthogonal_input(vector)), axis=-1)
        xv_t = _im2col_T(v_cat, self.k, self.stride, self.padding, n_out)
        xs_t = _im2col_T(scalar[:, :, None, :], self.k, self.stride,
                         self.padding, n_out)

        cd = self.compute_dtype
        ov_t, os_t = fused_conv_pallas(self.w_vec_t.astype(cd), xv_t.astype(cd),
                                       self.w_sca_t.astype(cd), xs_t.astype(cd))

        dim_out, sdim_out = ov_t.shape[0], os_t.shape[0]
        # rows are ordered (b, w, t): (C_out, B*2*N_out) -> [B, N_out, 2, C_out]
        v_out = jnp.transpose(ov_t.T.reshape(b, 2, n_out, dim_out), (0, 2, 1, 3))
        s_out = os_t.T.reshape(b, n_out, sdim_out)
        return v_out, s_out


# -----------------------------------------------------------------------------
# Pure-JAX reference reproducing the exact PyTorch NCHW path (for verification)
# -----------------------------------------------------------------------------
def _ref_forward(module, vector, scalar):
    def conv_nchw(x, w):
        if module.padding > 0:
            x = jnp.pad(x, ((0, 0), (0, 0),
                            (module.padding, module.padding), (0, 0)),
                        mode="edge")
        return jax.lax.conv_general_dilated(
            x, w, window_strides=(module.stride, 1), padding="VALID",
            dimension_numbers=("NCHW", "OIHW", "NCHW"))

    v = jnp.concatenate((vector, orthogonal_input(vector)), axis=-1)
    v = jnp.transpose(v, (0, 3, 1, 2))                       # NCHW, H=N, W=2
    v_out = jnp.transpose(conv_nchw(v, module.w_vec_torch), (0, 2, 3, 1))
    s = jnp.transpose(scalar[:, :, None, :], (0, 3, 1, 2))   # NCHW, H=N, W=1
    s_out = jnp.transpose(conv_nchw(s, module.w_sca_torch), (0, 2, 3, 1))[..., 0, :]
    return v_out, s_out


if __name__ == "__main__":
    key = jax.random.PRNGKey(0)
    k_v, k_s, k_w = jax.random.split(key, 3)

    # small shapes: batch=2, seq=32, dim_in=8 (vector carries dim_in//2=4 chans),
    # dim_out=16, scalar_dim_in=4, scalar_dim_out=8, kernel=(16,1)
    B, N = 2, 32
    dim_in, dim_out = 8, 16
    scalar_dim_in, scalar_dim_out = 4, 8

    vector = jax.random.normal(k_v, (B, N, 2, dim_in // 2), jnp.float32)
    scalar = jax.random.normal(k_s, (B, N, scalar_dim_in), jnp.float32)

    # --- f32, stride=1, padding=0 ---------------------------------------------
    mod = ConvolutionalPallas(dim_in, dim_out, scalar_dim_out, scalar_dim_in,
                              stride=1, padding=0, kernel=(16, 1), key=k_w)
    v_out, s_out = jax.jit(mod.__call__)(vector, scalar)
    jax.block_until_ready((v_out, s_out))
    v_ref, s_ref = _ref_forward(mod, vector, scalar)
    assert v_out.shape == v_ref.shape and s_out.shape == s_ref.shape
    assert jnp.allclose(v_out, v_ref, atol=1e-4, rtol=1e-4)
    assert jnp.allclose(s_out, s_ref, atol=1e-4, rtol=1e-4)

    # --- f32, stride=2, padding=8 (replicate padding + strided conv) -----------
    mod2 = ConvolutionalPallas(dim_in, dim_out, scalar_dim_out, scalar_dim_in,
                               stride=2, padding=8, kernel=(16, 1), key=k_w)
    v2, s2 = jax.jit(mod2.__call__)(vector, scalar)
    jax.block_until_ready((v2, s2))
    v2r, s2r = _ref_forward(mod2, vector, scalar)
    assert v2.shape == v2r.shape and s2.shape == s2r.shape
    assert jnp.allclose(v2, v2r, atol=1e-4, rtol=1e-4)
    assert jnp.allclose(s2, s2r, atol=1e-4, rtol=1e-4)

    # --- bf16 MXU inputs (v6e/v7x fast path), f32 accumulation ------------------
    mod3 = ConvolutionalPallas(dim_in, dim_out, scalar_dim_out, scalar_dim_in,
                               stride=1, padding=0, kernel=(16, 1), key=k_w,
                               compute_dtype=jnp.bfloat16)
    v3, s3 = jax.jit(mod3.__call__)(vector, scalar)
    jax.block_until_ready((v3, s3))
    assert jnp.allclose(v3, v_ref, atol=7e-2, rtol=7e-2)
    assert jnp.allclose(s3, s_ref, atol=7e-2, rtol=7e-2)

    print("KERNEL_OK")
</pallas_src>

<mosaic_0001>
module attributes {stable_mosaic.version = 11 : i64} {
  func.func @_fused_conv_kernel(%arg0: i32, %arg1: memref<16x128xf32, #tpu.memory_space<vmem>>, %arg2: memref<128x256xf32, #tpu.memory_space<vmem>>, %arg3: memref<8x64xf32, #tpu.memory_space<vmem>>, %arg4: memref<64x128xf32, #tpu.memory_space<vmem>>, %arg5: memref<16x256xf32, #tpu.memory_space<vmem>>, %arg6: memref<8x128xf32, #tpu.memory_space<vmem>>) attributes {dimension_semantics = [#tpu.dimension_semantics<parallel>], iteration_bounds = array<i64: 1>, scalar_prefetch = 0 : i64, scratch_operands = 0 : i64, tpu.core_type = #tpu.core_type<tc>, window_params = [{pipeline_mode = #tpu.pipeline_mode<synchronous>, transform_indices = @transform_0, window_bounds = array<i64: 16, 128>}, {transform_indices = @transform_1, window_bounds = array<i64: 128, 256>}, {pipeline_mode = #tpu.pipeline_mode<synchronous>, transform_indices = @transform_2, window_bounds = array<i64: 8, 64>}, {transform_indices = @transform_3, window_bounds = array<i64: 64, 128>}, {transform_indices = @transform_4, window_bounds = array<i64: 16, 256>}, {transform_indices = @transform_5, window_bounds = array<i64: 8, 128>}]} {
    %c0 = arith.constant 0 : index
    %c0_0 = arith.constant 0 : index
    %0 = vector.load %arg1[%c0, %c0_0] : memref<16x128xf32, #tpu.memory_space<vmem>>, vector<16x128xf32>
    %c0_1 = arith.constant 0 : index
    %c0_2 = arith.constant 0 : index
    %1 = vector.load %arg2[%c0_1, %c0_2] : memref<128x256xf32, #tpu.memory_space<vmem>>, vector<128x256xf32>
    %cst = arith.constant dense<0.000000e+00> : vector<16x256xf32>
    %2 = tpu.matmul %0, %1, %cst {dimension_numbers = #tpu.dot_dimension_numbers<[1], [0], [0], [1], [0, 0, 1, 1], [], []>} : vector<16x128xf32>, vector<128x256xf32>, vector<16x256xf32> -> vector<16x256xf32>
    %c0_3 = arith.constant 0 : index
    %c0_4 = arith.constant 0 : index
    %3 = vector.load %arg5[%c0_3, %c0_4] : memref<16x256xf32, #tpu.memory_space<vmem>>, vector<16x256xf32>
    tpu.vector_store %arg5[%c0_3, %c0_4], %2 {strides = array<i32>} : memref<16x256xf32, #tpu.memory_space<vmem>>, vector<16x256xf32>,
    %c0_5 = arith.constant 0 : index
    %c0_6 = arith.constant 0 : index
    %4 = vector.load %arg3[%c0_5, %c0_6] : memref<8x64xf32, #tpu.memory_space<vmem>>, vector<8x64xf32>
    %c0_7 = arith.constant 0 : index
    %c0_8 = arith.constant 0 : index
    %5 = vector.load %arg4[%c0_7, %c0_8] : memref<64x128xf32, #tpu.memory_space<vmem>>, vector<64x128xf32>
    %cst_9 = arith.constant dense<0.000000e+00> : vector<8x128xf32>
    %6 = tpu.matmul %4, %5, %cst_9 {dimension_numbers = #tpu.dot_dimension_numbers<[1], [0], [0], [1], [0, 0, 1, 1], [], []>} : vector<8x64xf32>, vector<64x128xf32>, vector<8x128xf32> -> vector<8x128xf32>
    %c0_10 = arith.constant 0 : index
    %c0_11 = arith.constant 0 : index
    %7 = vector.load %arg6[%c0_10, %c0_11] : memref<8x128xf32, #tpu.memory_space<vmem>>, vector<8x128xf32>
    tpu.vector_store %arg6[%c0_10, %c0_11], %6 {strides = array<i32>} : memref<8x128xf32, #tpu.memory_space<vmem>>, vector<8x128xf32>,
    return
  }
  func.func @transform_0(%arg0: i32) -> (i32, i32) {
    %c0_i32 = arith.constant 0 : i32
    %c0_i32_0 = arith.constant 0 : i32
    %c0_i32_1 = arith.constant 0 : i32
    return %c0_i32, %c0_i32_0 : i32, i32
  }
  func.func @transform_1(%arg0: i32) -> (i32, i32) {
    %c0_i32 = arith.constant 0 : i32
    %c0_i32_0 = arith.constant 0 : i32
    return %c0_i32, %arg0 : i32, i32
  }
  func.func @transform_2(%arg0: i32) -> (i32, i32) {
    %c0_i32 = arith.constant 0 : i32
    %c0_i32_0 = arith.constant 0 : i32
    %c0_i32_1 = arith.constant 0 : i32
    return %c0_i32, %c0_i32_0 : i32, i32
  }
  func.func @transform_3(%arg0: i32) -> (i32, i32) {
    %c0_i32 = arith.constant 0 : i32
    %c0_i32_0 = arith.constant 0 : i32
    return %c0_i32, %arg0 : i32, i32
  }
  func.func @transform_4(%arg0: i32) -> (i32, i32) {
    %c0_i32 = arith.constant 0 : i32
    %c0_i32_0 = arith.constant 0 : i32
    return %c0_i32, %arg0 : i32, i32
  }
  func.func @transform_5(%arg0: i32) -> (i32, i32) {
    %c0_i32 = arith.constant 0 : i32
    %c0_i32_0 = arith.constant 0 : i32
    return %c0_i32, %arg0 : i32, i32
  }
}

</mosaic_0001>

<bundles_post_ra>
// kernel: a_call__.1
= control target key start
LH: loop header
LB: loop body
LE: loop exit
PB: predicated region body
PF: predicated region fallthrough
CT: control target
= control target key end

     0   :  { %v302_v3 = vmov 0.0|0.0   ;;  %v303_v4 = vmov 0.0   ;;  %vm304_vm0 = vmmov 0   ;;  %vm143_vm1 = vcmask 523264   ;;  %s486_s1 = inlined_call_operand.vmem [shape: f32[128,256], index: 1, kind: input, shape index: {}]   ;;  %s487_s3 = inlined_call_operand.vmem [shape: f32[64,128], index: 3, kind: input, shape index: {}]   ;;  %s488_s2 = inlined_call_operand.vmem [shape: f32[8,64], index: 2, kind: input, shape index: {}]   ;;  %s489_s0 = inlined_call_operand.vmem [shape: f32[16,128], index: 0, kind: input, shape index: {}]   ;;  %s490_s5 = inlined_call_operand.vmem [shape: f32[8,128], index: 5, kind: output, shape index: {1}]   ;;  %s491_s4 = inlined_call_operand.vmem [shape: f32[16,256], index: 4, kind: output, shape index: {0}]  }
   0x1   :  { %v22_v0 = vld [vmem:[%s486_s1 + $0x8] sm:$0xff]  ;;  %v24_v1 = vld [vmem:[%s486_s1 + $0x18] sm:$0xff]  ;;  %v21_v2 = vld [vmem:[%s486_s1] sm:$0xff]  ;;  %287 = vmatprep.subr.bf16.mxu1 %v302_v3  ;;  %117 = vmatprep.mubr.f32.mxu0 %v303_v4 }
   0x2   :  { %v255_v5 = vpack.c.bf16 %v24_v1, %v22_v0  ;;  %v23_v6 = vld [vmem:[%s486_s1 + $0x10] sm:$0xff]  ;;  %v26_v7 = vld [vmem:[%s486_s1 + $0x28] sm:$0xff]  ;;  %v28_v8 = vld [vmem:[%s486_s1 + $0x38] sm:$0xff]  ;;  %252 = vmatprep.mubr.msk.f32.mxu1 %vm304_vm0, %v303_v4 }
   0x3   :  { %v257_v9 = vpack.c.bf16 %v23_v6, %v21_v2  ;;  %v259_v10 = vpack.c.bf16 %v28_v8, %v26_v7  ;;  %v25_v11 = vld [vmem:[%s486_s1 + $0x20] sm:$0xff]  ;;  %v27_v12 = vld [vmem:[%s486_s1 + $0x30] sm:$0xff]  ;;  %v30_v13 = vld [vmem:[%s486_s1 + $0x48] sm:$0xff] }
   0x4   :  { %256 = vmatprep.subr.bf16.mxu0 %v255_v5  ;;  %v32_v14 = vld [vmem:[%s486_s1 + $0x58] sm:$0xff]  ;;  %v261_v15 = vpack.c.bf16 %v27_v12, %v25_v11  ;;  %v29_v17 = vld [vmem:[%s486_s1 + $0x40] sm:$0xff]  ;;  %v31_v18 = vld [vmem:[%s486_s1 + $0x50] sm:$0xff] }
   0x5   :  { %258 = vmatpush1.bf16.msra.mxu0 %v257_v9  ;;  %v263_v16 = vpack.c.bf16 %v32_v14, %v30_v13  ;;  %v34_v19 = vld [vmem:[%s486_s1 + $0x68] sm:$0xff]  ;;  %v36_v20 = vld [vmem:[%s486_s1 + $0x78] sm:$0xff]  ;;  %v265_v21 = vpack.c.bf16 %v31_v18, %v29_v17  ;;  %v135_v22 = vld [vmem:[%s487_s3] sm:$0xff] }
   0x6   :  { %260 = vmatprep.subr.bf16.mxu0 %v259_v10  ;;  %v136_v23 = vld [vmem:[%s487_s3 + $0x8] sm:$0xff]  ;;  %v267_v24 = vpack.c.bf16 %v36_v20, %v34_v19  ;;  %v33_v25 = vld [vmem:[%s486_s1 + $0x60] sm:$0xff]  ;;  %v35_v26 = vld [vmem:[%s486_s1 + $0x70] sm:$0xff] }
   0x7   :  { %v38_v27 = vld [vmem:[%s486_s1 + $0x88] sm:$0xff]  ;;  %v288_v28 = vpack.c.bf16 %v136_v23, %v135_v22  ;;  %v40_v29 = vld [vmem:[%s486_s1 + $0x98] sm:$0xff]  ;;  %v137_v30 = vld [vmem:[%s487_s3 + $0x10] sm:$0xff]  ;;  %v269_v33 = vpack.c.bf16 %v35_v26, %v33_v25 }
   0x8   :  { %v138_v31 = vld [vmem:[%s487_s3 + $0x18] sm:$0xff]  ;;  %v139_v34 = vld [vmem:[%s487_s3 + $0x20] sm:$0xff]  ;;  %v140_v35 = vld [vmem:[%s487_s3 + $0x28] sm:$0xff]  ;;  %v271_v36 = vpack.c.bf16 %v40_v29, %v38_v27 }
   0x9   :  { %262 = vmatpush1.bf16.msra.mxu0 %v261_v15  ;;  %289 = vmatpush3.bf16.msra.mxu1 %v288_v28  ;;  %v291_v32 = vpack.c.bf16 %v138_v31, %v137_v30  ;;  %v37_v37 = vld [vmem:[%s486_s1 + $0x80] sm:$0xff]  ;;  %v39_v38 = vld [vmem:[%s486_s1 + $0x90] sm:$0xff]  ;;  %v42_v39 = vld [vmem:[%s486_s1 + $0xa8] sm:$0xff]  ;;  %v294_v41 = vpack.c.bf16 %v140_v35, %v139_v34 }
   0xa   :  { %264 = vmatprep.subr.bf16.mxu0 %v263_v16  ;;  %290 = vmatprep.subr.bf16.mxu1 %v302_v3  ;;  %v44_v40 = vld [vmem:[%s486_s1 + $0xb8] sm:$0xff]  ;;  %v273_v42 = vpack.c.bf16 %v39_v38, %v37_v37  ;;  %v141_v43 = vld [vmem:[%s487_s3 + $0x30] sm:$0xff]  ;;  %v41_v46 = vld [vmem:[%s486_s1 + $0xa0] sm:$0xff] }
   0xb   :  { %v142_v44 = vld [vmem:[%s487_s3 + $0x38] sm:$0xff]  ;;  %v275_v45 = vpack.c.bf16 %v44_v40, %v42_v39  ;;  %v43_v47 = vld [vmem:[%s486_s1 + $0xb0] sm:$0xff]  ;;  %v46_v48 = vld [vmem:[%s486_s1 + $0xc8] sm:$0xff] }
   0xc   :  { %v48_v49 = vld [vmem:[%s486_s1 + $0xd8] sm:$0xff]  ;;  %v297_v50 = vpack.c.bf16 %v142_v44, %v141_v43  ;;  %v277_v51 = vpack.c.bf16 %v43_v47, %v41_v46  ;;  %v45_v53 = vld [vmem:[%s486_s1 + $0xc0] sm:$0xff]  ;;  %v47_v54 = vld [vmem:[%s486_s1 + $0xd0] sm:$0xff] }
   0xd   :  { %266 = vmatpush1.bf16.msra.mxu0 %v265_v21  ;;  %292 = vmatpush3.bf16.msra.mxu1 %v291_v32  ;;  %v279_v52 = vpack.c.bf16 %v48_v49, %v46_v48  ;;  %v50_v55 = vld [vmem:[%s486_s1 + $0xe8] sm:$0xff]  ;;  %v52_v56 = vld [vmem:[%s486_s1 + $0xf8] sm:$0xff]  ;;  %v134_v57 = vld [vmem:[%s488_s2] sm:$0xff]  ;;  %v281_v58 = vpack.c.bf16 %v47_v54, %v45_v53 }
   0xe   :  { %268 = vmatprep.subr.bf16.mxu0 %v267_v24  ;;  %293 = vmatprep.subr.bf16.mxu1 %v302_v3  ;;  %v283_v59 = vpack.c.bf16 %v52_v56, %v50_v55  ;;  %v49_v60 = vld [vmem:[%s486_s1 + $0xe0] sm:$0xff]  ;;  %v51_v61 = vld [vmem:[%s486_s1 + $0xf0] sm:$0xff]  ;;  %v20_v0 = vld [vmem:[%s489_s0 + $0x8] sm:$0xff] }
   0xf   :  { %v285_v62 = vpack.c.bf16 %v51_v61, %v49_v60  ;;  %v19_v63 = vld [vmem:[%s489_s0] sm:$0xff] }
  0x11   :  { %270 = vmatpush1.bf16.msra.mxu0 %v269_v33  ;;  %295 = vmatpush3.bf16.msra.mxu1 %v294_v41 }
  0x12   :  { %272 = vmatprep.subr.bf16.mxu0 %v271_v36  ;;  %296 = vmatprep.subr.bf16.mxu1 %v302_v3 }
  0x15   :  { %274 = vmatpush1.bf16.msra.mxu0 %v273_v42  ;;  %298 = vmatpush3.bf16.msra.mxu1 %v297_v50 }
  0x16   :  { %276 = vmatprep.subr.bf16.mxu0 %v275_v45 }
  0x18   :  { %253 = vmatmul.mubr.msk.f32.vlgmr.msra.gmra.mrb[0].mxu1 %vm143_vm1, %v134_v57 }
  0x19   :  { %278 = vmatpush1.bf16.msra.mxu0 %v277_v51 }
  0x1a   :  { %280 = vmatprep.subr.bf16.mxu0 %v279_v52 }
  0x1d   :  { %282 = vmatpush1.bf16.msra.mxu0 %v281_v58 }
  0x1e   :  { %284 = vmatprep.subr.bf16.mxu0 %v283_v59 }
  0x21   :  { %286 = vmatpush1.bf16.msra.mxu0 %v285_v62 }
  0x24   :  { %118 = vmatmul.mubr.f32.vlgmr.msra.gmra.mrb[0].mxu0 %v19_v63 }
  0x25   :  { %123 = vmatprep.mubr.f32.mxu0 %v303_v4 }
  0x28   :  { %124 = vmatmul.mubr.f32.gmra.mrb[2].mxu0 %v20_v0 }
  0xeb   :  { %v213_v1 = vpop.f32.mrb[0].mxu1 }
  0xec   :  { %217 = vst [vmem:[%s490_s5] sm:$0xff] %v213_v1  ;;  %v254_v2 = vpop.f32.mrb[1].mxu1 }
  0xf7   :  { %v119_v3 = vpop.f32.mrb[0].mxu0 }
  0xf8   :  { %130 = vst [vmem:[%s491_s4] sm:$0xff] %v119_v3  ;;  %v121_v5 = vpop.f32.mrb[1].mxu0 }
  0xf9   :  { %131 = vst [vmem:[%s491_s4 + $0x8] sm:$0xff] %v121_v5 }
  0xfb   :  { %v125_v4 = vpop.f32.mrb[2].mxu0 }
  0xfc   :  { %132 = vst [vmem:[%s491_s4 + $0x10] sm:$0xff] %v125_v4  ;;  %v127_v6 = vpop.f32.mrb[3].mxu0 }
  0xfd   :  { %133 = vst [vmem:[%s491_s4 + $0x18] sm:$0xff] %v127_v6 }

</bundles_post_ra>
